<compile_context>
chip_gen: v7x
topology: tpu7x:2x2x1
jax: 0.10.0
libtpu: 0.0.40
codegen_flags: <defaults>
</compile_context>

<pallas_src>
import jax
import jax.numpy as jnp
from jax.experimental import pallas as pl
from jax.experimental.pallas import tpu as pltpu


def _round_up(x, m):
    return ((x + m - 1) // m) * m


def _cdiv(a, b):
    return -(-a // b)


def _device_config():
    """Per-generation tile targets and VMEM budgets."""
    try:
        kind = jax.devices()[0].device_kind.lower()
    except Exception:  # pragma: no cover
        kind = ""
    if "v7" in kind or "tpu7" in kind:
        # 64 MiB VMEM per TensorCore, 2 TCs, ~3.2 TB/s HBM -> AI threshold ~310.
        return dict(vmem_cap=64 << 20, tm_target=512, num_cores=2,
                    budget_frac=0.70, resident_frac=0.31)
    if "v6" in kind:
        # 128 MiB VMEM, 918 TF/s vs ~1.3 TB/s -> needs large tm to be MXU-bound.
        return dict(vmem_cap=128 << 20, tm_target=1024, num_cores=1,
                    budget_frac=0.78, resident_frac=0.31)
    # v5e / older / unknown: conservative (roofline threshold ~240 FLOPs/byte).
    return dict(vmem_cap=128 << 20, tm_target=256, num_cores=1,
                budget_frac=0.78, resident_frac=0.31)


# ---------------------------------------------------------------------------
# Kernels
# ---------------------------------------------------------------------------

def _make_resident_kernel(compute_dtype):
    """Weights fully resident in VMEM: 1-D grid over token tiles, single shot."""
    def kernel(x_ref, w1_ref, b1_ref, w2_ref, b2_ref, o_ref):
        x = x_ref[...].astype(compute_dtype)
        h = jnp.dot(x, w1_ref[...], preferred_element_type=jnp.float32)
        h = jnp.maximum(h + b1_ref[...], 0.0)            # bias + ReLU
        # dropout(p) in eval mode == identity
        out = jnp.dot(h.astype(compute_dtype), w2_ref[...],
                      preferred_element_type=jnp.float32) + b2_ref[...]
        o_ref[...] = out.astype(o_ref.dtype)
    return kernel


def _make_chunked_kernel(use_acc, compute_dtype):
    """Filter dimension chunked over an 'arbitrary' grid axis; f32 accumulation.

    If use_acc is False (f32 output) the output block itself (resident across k)
    is used as the accumulator, saving the scratch and the epilogue copy.
    """
    def kernel(x_ref, w1_ref, b1_ref, w2_ref, b2_ref, o_ref, *scratch):
        acc_ref = scratch[0] if use_acc else o_ref
        k = pl.program_id(1)

        @pl.when(k == 0)
        def _():
            acc_ref[...] = jnp.zeros_like(acc_ref)

        x = x_ref[...].astype(compute_dtype)
        h = jnp.dot(x, w1_ref[...], preferred_element_type=jnp.float32)
        h = jnp.maximum(h + b1_ref[...], 0.0)            # per-chunk bias + ReLU (exact)
        # dropout(p) in eval mode == identity
        acc_ref[...] += jnp.dot(h.astype(compute_dtype), w2_ref[...],
                                preferred_element_type=jnp.float32)

        @pl.when(k == pl.num_programs(1) - 1)
        def _():
            o_ref[...] = (acc_ref[...] + b2_ref[...]).astype(o_ref.dtype)
    return kernel


# ---------------------------------------------------------------------------
# One-time parameter preparation (hoisted out of the forward call)
# ---------------------------------------------------------------------------

def prepare_ffn_params(w1_pt, b1, w2_pt, b2, *, compute_dtype=jnp.bfloat16,
                       max_tf=512):
    """Pre-transpose / cast / pad the FFN parameters ONCE.

    w1_pt: layer1.weight, PyTorch layout (filter, hidden)
    w2_pt: layer2.weight, PyTorch layout (hidden, filter)
    Returns a dict with (in, out)-layout compute_dtype weights padded so the
    last two dims are lane-dense and the filter dim splits into `nk` chunks of
    `tf` (each a multiple of 128) with minimal zero padding.
    """
    filt, hidden = w1_pt.shape
    assert w2_pt.shape == (hidden, filt)

    hidden_p = _round_up(hidden, 128)
    filt_128 = _round_up(filt, 128)
    nk = _cdiv(filt_128, max_tf)
    tf = _round_up(_cdiv(filt_128, nk), 128)
    filt_p = nk * tf

    f32 = jnp.float32
    w1 = jnp.zeros((hidden_p, filt_p), compute_dtype).at[:hidden, :filt].set(
        jnp.asarray(w1_pt, f32).T.astype(compute_dtype))
    w2 = jnp.zeros((filt_p, hidden_p), compute_dtype).at[:filt, :hidden].set(
        jnp.asarray(w2_pt, f32).T.astype(compute_dtype))
    b1p = jnp.zeros((1, filt_p), f32).at[0, :filt].set(jnp.asarray(b1, f32))
    b2p = jnp.zeros((1, hidden_p), f32).at[0, :hidden].set(jnp.asarray(b2, f32))

    return dict(w1=w1, b1=b1p, w2=w2, b2=b2p,
                hidden=hidden, filt=filt, hidden_p=hidden_p, filt_p=filt_p,
                tf=tf, nk=nk, compute_dtype=compute_dtype)


# ---------------------------------------------------------------------------
# Forward wrapper
# ---------------------------------------------------------------------------

def feed_forward_network(x, params, *, force_chunked=False):
    """x: (..., hidden). params: from prepare_ffn_params. Returns (..., hidden)."""
    hidden = params["hidden"]
    hidden_p = params["hidden_p"]
    filt_p = params["filt_p"]
    compute_dtype = params["compute_dtype"]

    orig_shape = x.shape
    out_dtype = x.dtype
    assert orig_shape[-1] == hidden
    x2d = x.reshape(-1, hidden)
    M = x2d.shape[0]

    cfg = _device_config()
    w_isz = jnp.dtype(compute_dtype).itemsize
    out_isz = jnp.dtype(out_dtype).itemsize

    # ---- choose resident vs chunked weight streaming -------------------------
    w_bytes = 2 * hidden_p * filt_p * w_isz            # W1 + W2 in compute dtype
    use_resident = (not force_chunked) and (2 * w_bytes <=
                                            cfg["resident_frac"] * cfg["vmem_cap"])
    if use_resident:
        nk_eff, tf_eff = 1, filt_p
    else:
        nk_eff, tf_eff = params["nk"], params["tf"]

    # ---- activation input: avoid pad/cast round-trip when already lane-dense -
    if hidden_p != hidden:
        # padded copy written once in compute dtype (halves the extra traffic)
        x_in = jnp.zeros((M, hidden_p), compute_dtype).at[:, :hidden].set(
            x2d.astype(compute_dtype))
    else:
        x_in = x2d                                      # streamed as-is, cast in-kernel
    x_isz = jnp.dtype(x_in.dtype).itemsize

    use_acc = (not use_resident) and (jnp.dtype(out_dtype) != jnp.dtype(jnp.float32))

    # ---- token tile selection under the per-generation VMEM budget -----------
    def vmem_needed(tm_):
        b = 2 * tm_ * hidden_p * x_isz                  # x tiles (double-buffered)
        b += 2 * hidden_p * tf_eff * w_isz              # W1 chunk
        b += 2 * tf_eff * hidden_p * w_isz              # W2 chunk
        b += 2 * (tf_eff + hidden_p) * 4                # biases
        b += 2 * tm_ * hidden_p * out_isz               # output tiles
        if use_acc:
            b += tm_ * hidden_p * 4                     # f32 accumulator scratch
        return b

    tm = min(cfg["tm_target"], _round_up(M, 8))
    # v7x megacore: make sure the 'parallel' token axis has work for both cores.
    if cfg["num_cores"] > 1 and _cdiv(M, tm) < cfg["num_cores"] and M > 8:
        tm = max(8, _round_up(_cdiv(M, cfg["num_cores"]), 8))
    budget = int(cfg["budget_frac"] * cfg["vmem_cap"])
    while vmem_needed(tm) > budget and tm > 8:
        tm = max(8, _round_up(tm // 2, 8))
    m_blocks = _cdiv(M, tm)

    vmem_limit = int(min(int(0.85 * cfg["vmem_cap"]),
                         max(vmem_needed(tm) + (8 << 20), 32 << 20)))

    # ---- realistic cost estimate ---------------------------------------------
    filt_used = nk_eff * tf_eff
    weight_refetches = 1 if (use_resident or m_blocks == 1) else m_blocks
    cost = pl.CostEstimate(
        flops=4 * M * hidden_p * filt_used,
        transcendentals=0,
        bytes_accessed=int(M * hidden_p * (x_isz + out_isz)
                           + weight_refetches * 2 * hidden_p * filt_used * w_isz),
    )

    out_shape = jax.ShapeDtypeStruct((M, hidden_p), out_dtype)

    if use_resident:
        kernel = _make_resident_kernel(compute_dtype)
        grid_spec = pltpu.PrefetchScalarGridSpec(
            num_scalar_prefetch=0,
            grid=(m_blocks,),
            in_specs=[
                pl.BlockSpec((tm, hidden_p), lambda i: (i, 0)),       # x tile
                pl.BlockSpec((hidden_p, filt_p), lambda i: (0, 0)),   # W1 (resident)
                pl.BlockSpec((1, filt_p), lambda i: (0, 0)),          # b1
                pl.BlockSpec((filt_p, hidden_p), lambda i: (0, 0)),   # W2 (resident)
                pl.BlockSpec((1, hidden_p), lambda i: (0, 0)),        # b2
            ],
            out_specs=pl.BlockSpec((tm, hidden_p), lambda i: (i, 0)),
        )
        dim_sem = ("parallel",)
    else:
        kernel = _make_chunked_kernel(use_acc, compute_dtype)
        scratch = [pltpu.VMEM((tm, hidden_p), jnp.float32)] if use_acc else []
        grid_spec = pltpu.PrefetchScalarGridSpec(
            num_scalar_prefetch=0,
            grid=(m_blocks, nk_eff),
            in_specs=[
                pl.BlockSpec((tm, hidden_p), lambda i, k: (i, 0)),    # x tile
                pl.BlockSpec((hidden_p, tf_eff), lambda i, k: (0, k)),  # W1 chunk
                pl.BlockSpec((1, tf_eff), lambda i, k: (0, k)),       # b1 chunk
                pl.BlockSpec((tf_eff, hidden_p), lambda i, k: (k, 0)),  # W2 chunk
                pl.BlockSpec((1, hidden_p), lambda i, k: (0, 0)),     # b2
            ],
            out_specs=pl.BlockSpec((tm, hidden_p), lambda i, k: (i, 0)),
            scratch_shapes=scratch,
        )
        dim_sem = ("parallel", "arbitrary")

    out = pl.pallas_call(
        kernel,
        out_shape=out_shape,
        grid_spec=grid_spec,
        compiler_params=pltpu.CompilerParams(
            dimension_semantics=dim_sem,
            vmem_limit_bytes=vmem_limit,
        ),
        cost_estimate=cost,
    )(x_in, params["w1"], params["b1"], params["w2"], params["b2"])

    if hidden_p != hidden:
        out = out[:, :hidden]
    return out.reshape(orig_shape)


# ---------------------------------------------------------------------------
# Test
# ---------------------------------------------------------------------------

def _xavier_uniform(key, shape, dtype=jnp.float32):
    # PyTorch xavier_uniform_ on a Linear weight of shape (out, in).
    fan_out, fan_in = shape
    bound = (6.0 / (fan_in + fan_out)) ** 0.5
    return jax.random.uniform(key, shape, dtype, minval=-bound, maxval=bound)


def _ref_ffn(x, w1_pt, b1, w2_pt, b2):
    hidden = x.shape[-1]
    h = jnp.maximum(x.reshape(-1, hidden) @ w1_pt.T + b1, 0.0)
    return (h @ w2_pt.T + b2).reshape(x.shape)


if __name__ == "__main__":
    key = jax.random.PRNGKey(0)
    k_x, k_w1, k_w2, k_x2, k_w3, k_w4, k_b3, k_b4 = jax.random.split(key, 8)

    # ---- Test 1: weights-resident fast path (matches module init: bias = 0) --
    batch, seq, hidden, filter_size = 2, 8, 32, 64
    x = jax.random.normal(k_x, (batch, seq, hidden), dtype=jnp.float32)
    w1_pt = _xavier_uniform(k_w1, (filter_size, hidden))   # layer1.weight (out, in)
    b1 = jnp.zeros((filter_size,), jnp.float32)            # layer1.bias
    w2_pt = _xavier_uniform(k_w2, (hidden, filter_size))   # layer2.weight
    b2 = jnp.zeros((hidden,), jnp.float32)                 # layer2.bias

    params = prepare_ffn_params(w1_pt, b1, w2_pt, b2)      # done once at init
    out = jax.block_until_ready(feed_forward_network(x, params))

    ref = _ref_ffn(x, w1_pt, b1, w2_pt, b2)
    assert out.shape == x.shape and out.dtype == x.dtype
    # bf16 compute vs f32 reference -> loosened tolerance.
    assert jnp.allclose(out, ref, atol=5e-2, rtol=5e-2), "mismatch (resident path)"

    # ---- Test 2: filter-chunked path (forced), nonzero biases -----------------
    hidden2, filter2 = 32, 256
    x2 = jax.random.normal(k_x2, (batch, seq, hidden2), dtype=jnp.float32)
    w3_pt = _xavier_uniform(k_w3, (filter2, hidden2))
    b3 = 0.1 * jax.random.normal(k_b3, (filter2,), dtype=jnp.float32)
    w4_pt = _xavier_uniform(k_w4, (hidden2, filter2))
    b4 = 0.1 * jax.random.normal(k_b4, (hidden2,), dtype=jnp.float32)

    params2 = prepare_ffn_params(w3_pt, b3, w4_pt, b4, max_tf=128)  # nk = 2 chunks
    out2 = jax.block_until_ready(
        feed_forward_network(x2, params2, force_chunked=True))

    ref2 = _ref_ffn(x2, w3_pt, b3, w4_pt, b4)
    assert jnp.allclose(out2, ref2, atol=5e-2, rtol=5e-2), "mismatch (chunked path)"

    print("KERNEL_OK")
</pallas_src>

<mosaic_0001>
module attributes {stable_mosaic.version = 11 : i64} {
  func.func @kernel(%arg0: i32, %arg1: memref<16x128xbf16, #tpu.memory_space<vmem>>, %arg2: memref<128x128xbf16, #tpu.memory_space<vmem>>, %arg3: memref<1x128xf32, #tpu.memory_space<vmem>>, %arg4: memref<128x128xbf16, #tpu.memory_space<vmem>>, %arg5: memref<1x128xf32, #tpu.memory_space<vmem>>, %arg6: memref<16x128xf32, #tpu.memory_space<vmem>>) attributes {dimension_semantics = [#tpu.dimension_semantics<parallel>], iteration_bounds = array<i64: 1>, scalar_prefetch = 0 : i64, scratch_operands = 0 : i64, tpu.core_type = #tpu.core_type<tc>, window_params = [{transform_indices = @transform_0, window_bounds = array<i64: 16, 128>}, {pipeline_mode = #tpu.pipeline_mode<synchronous>, transform_indices = @transform_1, window_bounds = array<i64: 128, 128>}, {pipeline_mode = #tpu.pipeline_mode<synchronous>, transform_indices = @transform_2, window_bounds = array<i64: 1, 128>}, {pipeline_mode = #tpu.pipeline_mode<synchronous>, transform_indices = @transform_3, window_bounds = array<i64: 128, 128>}, {pipeline_mode = #tpu.pipeline_mode<synchronous>, transform_indices = @transform_4, window_bounds = array<i64: 1, 128>}, {transform_indices = @transform_5, window_bounds = array<i64: 16, 128>}]} {
    %c0 = arith.constant 0 : index
    %c0_0 = arith.constant 0 : index
    %0 = vector.load %arg1[%c0, %c0_0] : memref<16x128xbf16, #tpu.memory_space<vmem>>, vector<16x128xbf16>
    %c0_1 = arith.constant 0 : index
    %c0_2 = arith.constant 0 : index
    %1 = vector.load %arg2[%c0_1, %c0_2] : memref<128x128xbf16, #tpu.memory_space<vmem>>, vector<128x128xbf16>
    %cst = arith.constant dense<0.000000e+00> : vector<16x128xf32>
    %2 = tpu.matmul %0, %1, %cst {dimension_numbers = #tpu.dot_dimension_numbers<[1], [0], [0], [1], [0, 0, 1, 1], [], []>} : vector<16x128xbf16>, vector<128x128xbf16>, vector<16x128xf32> -> vector<16x128xf32>
    %c0_3 = arith.constant 0 : index
    %c0_4 = arith.constant 0 : index
    %3 = vector.load %arg3[%c0_3, %c0_4] : memref<1x128xf32, #tpu.memory_space<vmem>>, vector<1x128xf32>
    %4 = vector.broadcast %3 : vector<1x128xf32> to vector<16x128xf32>
    %5 = arith.addf %2, %4 : vector<16x128xf32>
    %cst_5 = arith.constant 0.000000e+00 : f32
    %6 = vector.broadcast %cst_5 : f32 to vector<16x128xf32>
    %7 = arith.maximumf %5, %6 : vector<16x128xf32>
    %8 = arith.truncf %7 : vector<16x128xf32> to vector<16x128xbf16>
    %c0_6 = arith.constant 0 : index
    %c0_7 = arith.constant 0 : index
    %9 = vector.load %arg4[%c0_6, %c0_7] : memref<128x128xbf16, #tpu.memory_space<vmem>>, vector<128x128xbf16>
    %cst_8 = arith.constant dense<0.000000e+00> : vector<16x128xf32>
    %10 = tpu.matmul %8, %9, %cst_8 {dimension_numbers = #tpu.dot_dimension_numbers<[1], [0], [0], [1], [0, 0, 1, 1], [], []>} : vector<16x128xbf16>, vector<128x128xbf16>, vector<16x128xf32> -> vector<16x128xf32>
    %c0_9 = arith.constant 0 : index
    %c0_10 = arith.constant 0 : index
    %11 = vector.load %arg5[%c0_9, %c0_10] : memref<1x128xf32, #tpu.memory_space<vmem>>, vector<1x128xf32>
    %12 = vector.broadcast %11 : vector<1x128xf32> to vector<16x128xf32>
    %13 = arith.addf %10, %12 : vector<16x128xf32>
    %c0_11 = arith.constant 0 : index
    %c0_12 = arith.constant 0 : index
    %14 = vector.load %arg6[%c0_11, %c0_12] : memref<16x128xf32, #tpu.memory_space<vmem>>, vector<16x128xf32>
    tpu.vector_store %arg6[%c0_11, %c0_12], %13 {strides = array<i32>} : memref<16x128xf32, #tpu.memory_space<vmem>>, vector<16x128xf32>,
    return
  }
  func.func @transform_0(%arg0: i32) -> (i32, i32) {
    %c0_i32 = arith.constant 0 : i32
    %c0_i32_0 = arith.constant 0 : i32
    return %arg0, %c0_i32 : i32, i32
  }
  func.func @transform_1(%arg0: i32) -> (i32, i32) {
    %c0_i32 = arith.constant 0 : i32
    %c0_i32_0 = arith.constant 0 : i32
    %c0_i32_1 = arith.constant 0 : i32
    return %c0_i32, %c0_i32_0 : i32, i32
  }
  func.func @transform_2(%arg0: i32) -> (i32, i32) {
    %c0_i32 = arith.constant 0 : i32
    %c0_i32_0 = arith.constant 0 : i32
    %c0_i32_1 = arith.constant 0 : i32
    return %c0_i32, %c0_i32_0 : i32, i32
  }
  func.func @transform_3(%arg0: i32) -> (i32, i32) {
    %c0_i32 = arith.constant 0 : i32
    %c0_i32_0 = arith.constant 0 : i32
    %c0_i32_1 = arith.constant 0 : i32
    return %c0_i32, %c0_i32_0 : i32, i32
  }
  func.func @transform_4(%arg0: i32) -> (i32, i32) {
    %c0_i32 = arith.constant 0 : i32
    %c0_i32_0 = arith.constant 0 : i32
    %c0_i32_1 = arith.constant 0 : i32
    return %c0_i32, %c0_i32_0 : i32, i32
  }
  func.func @transform_5(%arg0: i32) -> (i32, i32) {
    %c0_i32 = arith.constant 0 : i32
    %c0_i32_0 = arith.constant 0 : i32
    return %arg0, %c0_i32 : i32, i32
  }
}

</mosaic_0001>

<bundles_post_ra>
// kernel: tpu_custom_call.1
= control target key start
LH: loop header
LB: loop body
LE: loop exit
PB: predicated region body
PF: predicated region fallthrough
CT: control target
= control target key end

     0   :  { %10 = vsyncpa [#allocation3], 0  ;;  %s626_s0 = inlined_call_operand.hbm [shape: bf16[16,128], index: 0, kind: input, shape index: {}]   ;;  %s627_s1 = inlined_call_operand.hbm [shape: bf16[128,128], index: 1, kind: input, shape index: {}]   ;;  %s628_s2 = inlined_call_operand.vmem [shape: f32[1,128], index: 2, kind: input, shape index: {}]   ;;  %s629_s3 = inlined_call_operand.hbm [shape: bf16[128,128], index: 3, kind: input, shape index: {}]   ;;  %s630_s4 = inlined_call_operand.vmem [shape: f32[1,128], index: 4, kind: input, shape index: {}]   ;;  %s631_s5 = inlined_call_operand.hbm [shape: f32[16,128], index: 5, kind: output, shape index: {}]  }
   0x1   :  { %11 = vsyncpa [#allocation6], 0 }
   0x2   :  { %12 = vsyncpa [#allocation4], 0  ;;  %s516_s18 = smov [#allocation5]   ;;  %s517_s20 = smov [#allocation2]  }
   0x3   :  { %s30_s19 = sshll.u32 %s516_s18, 4  ;;  %s18_s21 = sshll.u32 %s517_s20, 4  ;;  %s31_s19 = int_to_ptr.vmem [resolvable:$true] %s30_s19  ;;  %s556_s21 = int_to_ptr.vmem [resolvable:$true] %s18_s21 }
   0x4   :  { %s422_s24 = scalar_lea.hbm %s627_s1, 1024 }
   0x5   :  { %p423_p0 = scmp.ne.s32.totalorder %s627_s1, %s422_s24  ;;  %p426_p1 = scmp.lt.u32.totalorder %s422_s24, %s627_s1 }
   0x7   :  { %p428_p2 = pnand %p426_p1, %p423_p0 }
   0x9   :  { %431 = shalt.err (!%p428_p2)
}
   0xa   :  { %s432_s29 = scalar_lea.vmem %s31_s19, 1024  ;;  %p437_p4 = scmp.lt.s32.totalorder %s31_s19, %s31_s19 }
   0xb   :  { %p433_p3 = scmp.ne.s32.totalorder %s31_s19, %s432_s29  ;;  %p438_p5 = scmp.lt.s32.totalorder %s432_s29, %s432_s29 }
   0xd   :  { %p439_p6 = por %p438_p5, %p437_p4 }
   0xf   :  { %p440_p7 = pnand %p439_p6, %p433_p3 }
  0x11   :  { %443 = shalt.err (!%p440_p7)
}
  0x12   :  { %s518_s30 = smov 64   ;;  %s519_s6 = smov 4  }
  0x13   :  { %36 = dma.hbm_to_vmem [thread:$0]  %s627_s1, 1024, %s31_s19, [#allocation6], %s518_s30, %s518_s30, %s519_s6  }
  0x14   :  { %s444_s11 = scalar_lea.hbm %s626_s0, 128 }
  0x15   :  { %p445_p8 = scmp.ne.s32.totalorder %s626_s0, %s444_s11  ;;  %p448_p9 = scmp.lt.u32.totalorder %s444_s11, %s626_s0 }
  0x17   :  { %p450_p10 = pnand %p448_p9, %p445_p8 }
  0x19   :  { %453 = shalt.err (!%p450_p10)
}
  0x1a   :  { %s454_s16 = scalar_lea.vmem %s556_s21, 128  ;;  %p459_p12 = scmp.lt.s32.totalorder %s556_s21, %s556_s21 }
  0x1b   :  { %p455_p11 = scmp.ne.s32.totalorder %s556_s21, %s454_s16  ;;  %p460_p13 = scmp.lt.s32.totalorder %s454_s16, %s454_s16 }
  0x1d   :  { %p461_p0 = por %p460_p13, %p459_p12 }
  0x1f   :  { %p462_p1 = pnand %p461_p0, %p455_p11 }
  0x21   :  { %465 = shalt.err (!%p462_p1)
}
  0x22   :  { %24 = dma.hbm_to_vmem [thread:$0]  %s626_s0, 128, %s556_s21, [#allocation3], %s518_s30, %s518_s30, %s519_s6  }
  0x23   :  { %s520_s18 = smov [#allocation7]   ;;  %s466_s23 = scalar_lea.hbm %s629_s3, 1024 }
  0x24   :  { %s44_s19 = sshll.u32 %s520_s18, 4  ;;  %p467_p2 = scmp.ne.s32.totalorder %s629_s3, %s466_s23  ;;  %s45_s19 = int_to_ptr.vmem [resolvable:$true] %s44_s19 }
  0x25   :  { %p470_p3 = scmp.lt.u32.totalorder %s466_s23, %s629_s3 }
  0x27   :  { %p472_p4 = pnand %p470_p3, %p467_p2 }
  0x29   :  { %475 = shalt.err (!%p472_p4)
}
  0x2a   :  { %s476_s28 = scalar_lea.vmem %s45_s19, 1024  ;;  %p481_p6 = scmp.lt.s32.totalorder %s45_s19, %s45_s19 }
  0x2b   :  { %p477_p5 = scmp.ne.s32.totalorder %s45_s19, %s476_s28  ;;  %p482_p7 = scmp.lt.s32.totalorder %s476_s28, %s476_s28 }
  0x2d   :  { %p483_p8 = por %p482_p7, %p481_p6 }
  0x2f   :  { %p484_p9 = pnand %p483_p8, %p477_p5 }
  0x31   :  { %487 = shalt.err (!%p484_p9)
}
  0x32   :  { %50 = dma.hbm_to_vmem [thread:$0]  %s629_s3, 1024, %s45_s19, [#allocation6], %s518_s30, %s518_s30, %s519_s6  }
  0x33   :  { %510 = dma.done.wait [#allocation3], 128  }
  0x34   :  { %511 = vsyncadd [#allocation3], 4294967168 }
  0x35   :  { %512 = dma.done.wait [#allocation6], 2048  }
  0x36   :  { %513 = vsyncadd [#allocation6], 4294965248  ;;  %v521_v0 = vmov 0.0   ;;  %vm522_vm0 = vmmov 0   ;;  %v405_v1 = vld [vmem:[#allocation5] sm:$0xff]   ;;  %v406_v2 = vld [vmem:[#allocation5 + $0x8] sm:$0xff]  }
  0x37   :  { %355 = vmatprep.subr.bf16.mxu0 %v521_v0  ;;  %371 = vmatprep.mubr.msk.bf16.mxu0 %vm522_vm0, %v521_v0  ;;  %v407_v3 = vld [vmem:[#allocation5 + $0x10] sm:$0xff]   ;;  %v414_v4 = vld [vmem:[#allocation7] sm:$0xff]   ;;  %v408_v5 = vld [vmem:[#allocation5 + $0x18] sm:$0xff]   ;;  %s523_s7 = smov [#allocation8]  }
  0x38   :  { %375 = vmatprep.subr.bf16.mxu1 %v521_v0  ;;  %391 = vmatprep.mubr.msk.bf16.mxu1 %vm522_vm0, %v521_v0  ;;  %v415_v6 = vld [vmem:[#allocation7 + $0x8] sm:$0xff]   ;;  %v409_v7 = vld [vmem:[#allocation5 + $0x20] sm:$0xff]   ;;  %v416_v8 = vld [vmem:[#allocation7 + $0x10] sm:$0xff]   ;;  %s305_s8 = sshll.u32 %s523_s7, 4  ;;  %s306_s8 = int_to_ptr.vmem [resolvable:$true] %s305_s8 }
  0x39   :  { %356 = vmatpush3.bf16.msra.mxu0 %v405_v1  ;;  %376 = vmatpush3.bf16.msra.mxu1 %v414_v4  ;;  %v410_v9 = vld [vmem:[#allocation5 + $0x28] sm:$0xff]   ;;  %v417_v10 = vld [vmem:[#allocation7 + $0x18] sm:$0xff]   ;;  %v411_v11 = vld [vmem:[#allocation5 + $0x30] sm:$0xff]   ;;  %p493_p11 = scmp.lt.s32.totalorder %s306_s8, %s306_s8 }
  0x3a   :  { %357 = vmatprep.subr.bf16.mxu0 %v521_v0  ;;  %377 = vmatprep.subr.bf16.mxu1 %v521_v0  ;;  %v418_v12 = vld [vmem:[#allocation7 + $0x20] sm:$0xff]   ;;  %v412_v13 = vld [vmem:[#allocation5 + $0x38] sm:$0xff]   ;;  %v419_v14 = vld [vmem:[#allocation7 + $0x28] sm:$0xff]  }
  0x3b   :  { %v413_v15 = vld [vmem:[#allocation2] sm:$0xff]   ;;  %v420_v16 = vld [vmem:[#allocation7 + $0x30] sm:$0xff]  }
  0x3c   :  { %v421_v17 = vld [vmem:[#allocation7 + $0x38] sm:$0xff]  }
  0x3d   :  { %358 = vmatpush3.bf16.msra.mxu0 %v406_v2  ;;  %378 = vmatpush3.bf16.msra.mxu1 %v415_v6  ;;  %v318_v18 = vld [vmem:[%s628_s2] ss:$0 sm:$0xff]  ;;  %s488_s2 = scalar_lea.vmem %s306_s8, 256 }
  0x3e   :  { %359 = vmatprep.subr.bf16.mxu0 %v521_v0  ;;  %379 = vmatprep.subr.bf16.mxu1 %v521_v0  ;;  %v328_v28 = vld [vmem:[%s630_s4] ss:$0 sm:$0xff]  ;;  %p489_p10 = scmp.ne.s32.totalorder %s306_s8, %s488_s2  ;;  %p494_p12 = scmp.lt.s32.totalorder %s488_s2, %s488_s2 }
  0x40   :  { %p495_p13 = por %p494_p12, %p493_p11 }
  0x41   :  { %360 = vmatpush3.bf16.msra.mxu0 %v407_v3  ;;  %380 = vmatpush3.bf16.msra.mxu1 %v416_v8 }
  0x42   :  { %361 = vmatprep.subr.bf16.mxu0 %v521_v0  ;;  %381 = vmatprep.subr.bf16.mxu1 %v521_v0  ;;  %p496_p0 = pnand %p495_p13, %p489_p10 }
  0x45   :  { %362 = vmatpush3.bf16.msra.mxu0 %v408_v5  ;;  %382 = vmatpush3.bf16.msra.mxu1 %v417_v10 }
  0x46   :  { %363 = vmatprep.subr.bf16.mxu0 %v521_v0  ;;  %383 = vmatprep.subr.bf16.mxu1 %v521_v0 }
  0x49   :  { %364 = vmatpush3.bf16.msra.mxu0 %v409_v7  ;;  %384 = vmatpush3.bf16.msra.mxu1 %v418_v12 }
  0x4a   :  { %365 = vmatprep.subr.bf16.mxu0 %v521_v0  ;;  %385 = vmatprep.subr.bf16.mxu1 %v521_v0 }
  0x4d   :  { %366 = vmatpush3.bf16.msra.mxu0 %v410_v9  ;;  %386 = vmatpush3.bf16.msra.mxu1 %v419_v14 }
  0x4e   :  { %367 = vmatprep.subr.bf16.mxu0 %v521_v0  ;;  %387 = vmatprep.subr.bf16.mxu1 %v521_v0 }
  0x51   :  { %368 = vmatpush3.bf16.msra.mxu0 %v411_v11  ;;  %388 = vmatpush3.bf16.msra.mxu1 %v420_v16 }
  0x52   :  { %369 = vmatprep.subr.bf16.mxu0 %v521_v0  ;;  %389 = vmatprep.subr.bf16.mxu1 %v521_v0 }
  0x55   :  { %370 = vmatpush3.bf16.msra.mxu0 %v412_v13  ;;  %390 = vmatpush3.bf16.msra.mxu1 %v421_v17 }
  0x58   :  { %372 = vmatmul.mubr.bf16.vlgmr.msra.gmra.mrb[0].mxu0 %v413_v15 }
 0x12b   :  { %v176_v19 = vpop.f32.mrb[0].mxu0 }
 0x12c   :  { %v177_v20 = vadd.f32 %v318_v18, %v176_v19  ;;  %v373_v21 = vpop.f32.mrb[1].mxu0 }
 0x12d   :  { %v179_v22 = vpop.f32.mrb[2].mxu0 }
 0x12e   :  { %v180_v23 = vadd.f32 %v318_v18, %v179_v22  ;;  %v374_v24 = vpop.f32.mrb[3].mxu0  ;;  %v183_v25 = vmax.f32 %v177_v20, 0.0 }
 0x130   :  { %v184_v26 = vmax.f32 %v180_v23, 0.0 }
 0x132   :  { %v185_v27 = vpack.c.bf16 %v184_v26, %v183_v25 }
 0x134   :  { %392 = vmatmul.mubr.bf16.vlgmr.msra.gmra.mrb[0].mxu1 %v185_v27 }
 0x207   :  { %v291_v29 = vpop.f32.mrb[0].mxu1 }
 0x208   :  { %v292_v30 = vadd.f32 %v328_v28, %v291_v29  ;;  %v393_v31 = vpop.f32.mrb[1].mxu1 }
 0x209   :  { %v294_v32 = vpop.f32.mrb[2].mxu1 }
 0x20a   :  { %298 = vst [vmem:[#allocation8] sm:$0xff] %v292_v30  ;;  %v295_v33 = vadd.f32 %v328_v28, %v294_v32  ;;  %v394_v34 = vpop.f32.mrb[3].mxu1 }
 0x20c   :  { %299 = vst [vmem:[#allocation8 + $0x8] sm:$0xff] %v295_v33 }
 0x20d   :  { %499 = shalt.err (!%p496_p0)
}
 0x20e   :  { %s500_s10 = scalar_lea.hbm %s631_s5, 256 }
 0x20f   :  { %p501_p1 = scmp.ne.s32.totalorder %s631_s5, %s500_s10  ;;  %p504_p2 = scmp.lt.u32.totalorder %s500_s10, %s631_s5 }
 0x211   :  { %p506_p3 = pnand %p504_p2, %p501_p1 }
 0x213   :  { %509 = shalt.err (!%p506_p3)
}
 0x214   :  { %s524_s15 = smov 128   ;;  %s525_s16 = smov 8  }
 0x215   :  { %311 = dma.vmem_to_hbm [thread:$0]  %s306_s8, 256, %s631_s5, [#allocation4], %s524_s15, %s524_s15, %s525_s16  }
 0x216   :  { %514 = dma.done.wait [#allocation4], 256  }
 0x217   :  { %515 = vsyncadd [#allocation4], 4294967040 }
 0x218   :  { %315 = vsyncpa [#allocation3], 1 }
 0x219   :  { %316 = vsyncpa [#allocation6], 1 }
 0x21a   :  { %317 = vsyncpa [#allocation4], 1 }

</bundles_post_ra>
